<compile_context>
chip_gen: v7x
topology: tpu7x:2x2x1
jax: 0.10.0
libtpu: 0.0.40
codegen_flags: <defaults>
</compile_context>

<pallas_src>
import jax
import jax.numpy as jnp
from jax.experimental import pallas as pl
from jax.experimental.pallas import tpu as pltpu


def _gcmc_kernel(a_ref, x_ref, o_ref, deg_ref):
    """One (i, j, k) grid step of out = (A @ X) * 1/max(deg, 1).

    a_ref:   (tm, tk) bf16 tile of adjacency A
    x_ref:   (tk, tn) f32 tile of src features X
    o_ref:   (tm, tn) f32 output tile (resident across the k axis; used as acc)
    deg_ref: (tm, 1)  f32 degree accumulator (VMEM scratch, reused across j)
    """
    j = pl.program_id(1)
    k = pl.program_id(2)
    nk = pl.num_programs(2)

    # Output block is resident across k -> init at k == 0.
    @pl.when(k == 0)
    def _():
        o_ref[...] = jnp.zeros_like(o_ref)

    # bf16 -> f32 once; reused by both the MXU matmul and the degree reduce
    # (f32 keeps the 0/1 sums exact for degrees > 256).
    a_tile = a_ref[...].astype(jnp.float32)

    # MXU: partial A @ X accumulated straight into the output block.
    o_ref[...] += jnp.dot(a_tile, x_ref[...],
                          preferred_element_type=jnp.float32)

    # Degree only depends on (i, k), not j: compute it during the j == 0 sweep
    # and reuse for j > 0 (scratch persists; j axis is "arbitrary").
    @pl.when((j == 0) & (k == 0))
    def _():
        deg_ref[...] = jnp.zeros_like(deg_ref)

    @pl.when(j == 0)
    def _():
        deg_ref[...] += jnp.sum(a_tile, axis=-1, keepdims=True)

    @pl.when(k == nk - 1)
    def _():
        # DGL's mean reducer yields 0 for zero-in-degree dst nodes: the
        # numerator is already 0, so clamping the denominator to 1 matches it.
        inv = pl.reciprocal(jnp.maximum(deg_ref[...], 1.0))  # exact (EUP path)
        o_ref[...] = o_ref[...] * inv


def _round_up(x, m):
    return ((x + m - 1) // m) * m


def gcmc_forward(adj, feats, *, tm=256, tn=512, tk=512):
    """Pallas implementation of GCMCLayer.forward (eval mode).

    adj:   [D, S] dense 0/1 adjacency (dst x src), any float dtype
    feats: [S, F] src node features (== features[0] in the reference)
    returns [D, F] dst node features (mean of in-neighbors), dtype of feats.
    """
    D, S = adj.shape
    S2, F = feats.shape
    assert S == S2

    SUB = 16  # sublane alignment (bf16 adjacency tiles pack 16 rows / vreg)

    # Clamp tiles to the (padded) problem dims.
    tm = min(tm, _round_up(D, SUB))
    tn = min(tn, _round_up(F, 128))
    tk = min(tk, _round_up(S, 128))

    # v7x has 2 TensorCores; keep >= 2 parallel row blocks when possible.
    while tm > SUB and -(-D // tm) < 2:
        tm = max(SUB, _round_up(tm // 2, SUB))

    Dp, Sp, Fp = _round_up(D, tm), _round_up(S, tk), _round_up(F, tn)

    # Adjacency holds only 0/1 -> bf16 cast is lossless and halves HBM traffic.
    a = adj.astype(jnp.bfloat16)
    if (Dp, Sp) != (D, S):
        a = jnp.pad(a, ((0, Dp - D), (0, Sp - S)))
    x = feats.astype(jnp.float32)
    if (Sp, Fp) != (S, F):
        x = jnp.pad(x, ((0, Sp - S), (0, Fp - F)))

    grid = (Dp // tm, Fp // tn, Sp // tk)

    out = pl.pallas_call(
        _gcmc_kernel,
        out_shape=jax.ShapeDtypeStruct((Dp, Fp), jnp.float32),
        grid_spec=pltpu.PrefetchScalarGridSpec(
            num_scalar_prefetch=0,
            grid=grid,
            in_specs=[
                pl.BlockSpec((tm, tk), lambda i, j, k: (i, k)),   # A tile
                pl.BlockSpec((tk, tn), lambda i, j, k: (k, j)),   # X tile
            ],
            out_specs=pl.BlockSpec((tm, tn), lambda i, j, k: (i, j)),
            scratch_shapes=[
                pltpu.VMEM((tm, 1), jnp.float32),                 # degree acc
            ],
        ),
        compiler_params=pltpu.CompilerParams(
            # j must be sequential ("arbitrary") so the degree computed during
            # the j == 0 sweep can be reused for j > 0 on the same core.
            dimension_semantics=("parallel", "arbitrary", "arbitrary"),
            vmem_limit_bytes=32 * 1024 * 1024,
        ),
    )(a, x)

    return out[:D, :F].astype(feats.dtype)


def gcmc_reference(adj, feats):
    deg = jnp.maximum(jnp.sum(adj, axis=-1, keepdims=True), 1.0)
    return (adj @ feats) / deg


if __name__ == "__main__":
    # Small, deterministic synthetic graph:
    #   num_src = 256 src nodes, num_dst = 64 dst nodes, in_dim = 128.
    num_src, num_dst, in_dim = 256, 64, 128

    key = jax.random.PRNGKey(0)
    k_adj, k_feat = jax.random.split(key)

    adj = jax.random.bernoulli(k_adj, p=0.1,
                               shape=(num_dst, num_src)).astype(jnp.float32)
    src_feats = jax.random.normal(k_feat, (num_src, in_dim), dtype=jnp.float32)

    # Unused-in-forward parameters from __init__ (shapes only, deterministic).
    out_dim = 64
    linear_weight = (jnp.arange(out_dim * in_dim, dtype=jnp.float32)
                     .reshape(out_dim, in_dim) * 1e-3)  # nn.Linear(in, out, bias=False)
    del linear_weight  # not used in forward()

    out = gcmc_forward(adj, src_feats)
    out = jax.block_until_ready(out)

    ref = gcmc_reference(adj, src_feats)
    assert out.shape == (num_dst, in_dim)
    assert jnp.allclose(out, ref, atol=1e-5, rtol=1e-5)

    print("KERNEL_OK")
</pallas_src>

<mosaic_0001>
module attributes {stable_mosaic.version = 11 : i64} {
  func.func @_gcmc_kernel(%arg0: i32, %arg1: i32, %arg2: i32, %arg3: memref<32x256xbf16, #tpu.memory_space<vmem>>, %arg4: memref<256x128xf32, #tpu.memory_space<vmem>>, %arg5: memref<32x128xf32, #tpu.memory_space<vmem>>, %arg6: memref<32x1xf32, #tpu.memory_space<vmem>>) attributes {dimension_semantics = [#tpu.dimension_semantics<parallel>, #tpu.dimension_semantics<arbitrary>, #tpu.dimension_semantics<arbitrary>], iteration_bounds = array<i64: 2, 1, 1>, scalar_prefetch = 0 : i64, scratch_operands = 1 : i64, tpu.core_type = #tpu.core_type<tc>, window_params = [{transform_indices = @transform_0, window_bounds = array<i64: 32, 256>}, {transform_indices = @transform_1, window_bounds = array<i64: 256, 128>}, {transform_indices = @transform_2, window_bounds = array<i64: 32, 128>}]} {
    %c0_i32 = arith.constant 0 : i32
    %0 = arith.cmpi eq, %arg2, %c0_i32 : i32
    %1 = arith.extui %0 : i1 to i32
    %c0_i32_0 = arith.constant 0 : i32
    %2 = arith.cmpi ne, %1, %c0_i32_0 : i32
    scf.if %2 {
      %cst_15 = arith.constant 0.000000e+00 : f32
      %21 = vector.broadcast %cst_15 : f32 to vector<32x128xf32>
      %c0_16 = arith.constant 0 : index
      %c0_17 = arith.constant 0 : index
      %22 = vector.load %arg5[%c0_16, %c0_17] : memref<32x128xf32, #tpu.memory_space<vmem>>, vector<32x128xf32>
      tpu.vector_store %arg5[%c0_16, %c0_17], %21 {strides = array<i32>} : memref<32x128xf32, #tpu.memory_space<vmem>>, vector<32x128xf32>,
    } else {
    }
    %c0 = arith.constant 0 : index
    %c0_1 = arith.constant 0 : index
    %3 = vector.load %arg3[%c0, %c0_1] : memref<32x256xbf16, #tpu.memory_space<vmem>>, vector<32x256xbf16>
    %4 = arith.extf %3 : vector<32x256xbf16> to vector<32x256xf32>
    %c0_2 = arith.constant 0 : index
    %c0_3 = arith.constant 0 : index
    %5 = vector.load %arg5[%c0_2, %c0_3] : memref<32x128xf32, #tpu.memory_space<vmem>>, vector<32x128xf32>
    %c0_4 = arith.constant 0 : index
    %c0_5 = arith.constant 0 : index
    %6 = vector.load %arg4[%c0_4, %c0_5] : memref<256x128xf32, #tpu.memory_space<vmem>>, vector<256x128xf32>
    %cst = arith.constant dense<0.000000e+00> : vector<32x128xf32>
    %7 = tpu.matmul %4, %6, %cst {dimension_numbers = #tpu.dot_dimension_numbers<[1], [0], [0], [1], [0, 0, 1, 1], [], []>} : vector<32x256xf32>, vector<256x128xf32>, vector<32x128xf32> -> vector<32x128xf32>
    %8 = arith.addf %5, %7 : vector<32x128xf32>
    %c0_6 = arith.constant 0 : index
    %c0_7 = arith.constant 0 : index
    %9 = vector.load %arg5[%c0_6, %c0_7] : memref<32x128xf32, #tpu.memory_space<vmem>>, vector<32x128xf32>
    tpu.vector_store %arg5[%c0_6, %c0_7], %8 {strides = array<i32>} : memref<32x128xf32, #tpu.memory_space<vmem>>, vector<32x128xf32>,
    %c0_i32_8 = arith.constant 0 : i32
    %10 = arith.cmpi eq, %arg1, %c0_i32_8 : i32
    %c0_i32_9 = arith.constant 0 : i32
    %11 = arith.cmpi eq, %arg2, %c0_i32_9 : i32
    %12 = arith.andi %10, %11 : i1
    %13 = arith.extui %12 : i1 to i32
    %c0_i32_10 = arith.constant 0 : i32
    %14 = arith.cmpi ne, %13, %c0_i32_10 : i32
    scf.if %14 {
      %cst_15 = arith.constant 0.000000e+00 : f32
      %21 = vector.broadcast %cst_15 : f32 to vector<32x1xf32>
      %c0_16 = arith.constant 0 : index
      %c0_17 = arith.constant 0 : index
      %22 = vector.load %arg6[%c0_16, %c0_17] : memref<32x1xf32, #tpu.memory_space<vmem>>, vector<32x1xf32>
      tpu.vector_store %arg6[%c0_16, %c0_17], %21 {strides = array<i32>} : memref<32x1xf32, #tpu.memory_space<vmem>>, vector<32x1xf32>,
    } else {
    }
    %c0_i32_11 = arith.constant 0 : i32
    %15 = arith.cmpi eq, %arg1, %c0_i32_11 : i32
    %16 = arith.extui %15 : i1 to i32
    %c0_i32_12 = arith.constant 0 : i32
    %17 = arith.cmpi ne, %16, %c0_i32_12 : i32
    scf.if %17 {
      %c0_15 = arith.constant 0 : index
      %c0_16 = arith.constant 0 : index
      %21 = vector.load %arg6[%c0_15, %c0_16] : memref<32x1xf32, #tpu.memory_space<vmem>>, vector<32x1xf32>
      %cst_17 = arith.constant dense<0.000000e+00> : vector<32xf32>
      %22 = vector.multi_reduction <add>, %4, %cst_17 [1] : vector<32x256xf32> to vector<32xf32>
      %23 = vector.shape_cast %22 : vector<32xf32> to vector<32x1xf32>
      %24 = arith.addf %21, %23 : vector<32x1xf32>
      %c0_18 = arith.constant 0 : index
      %c0_19 = arith.constant 0 : index
      %25 = vector.load %arg6[%c0_18, %c0_19] : memref<32x1xf32, #tpu.memory_space<vmem>>, vector<32x1xf32>
      tpu.vector_store %arg6[%c0_18, %c0_19], %24 {strides = array<i32>} : memref<32x1xf32, #tpu.memory_space<vmem>>, vector<32x1xf32>,
    } else {
    }
    %c0_i32_13 = arith.constant 0 : i32
    %18 = arith.cmpi eq, %arg2, %c0_i32_13 : i32
    %19 = arith.extui %18 : i1 to i32
    %c0_i32_14 = arith.constant 0 : i32
    %20 = arith.cmpi ne, %19, %c0_i32_14 : i32
    scf.if %20 {
      %c0_15 = arith.constant 0 : index
      %c0_16 = arith.constant 0 : index
      %21 = vector.load %arg6[%c0_15, %c0_16] : memref<32x1xf32, #tpu.memory_space<vmem>>, vector<32x1xf32>
      %cst_17 = arith.constant 1.000000e+00 : f32
      %22 = vector.broadcast %cst_17 : f32 to vector<32x1xf32>
      %23 = arith.maximumf %21, %22 : vector<32x1xf32>
      %24 = tpu.reciprocal %23 : vector<32x1xf32> -> vector<32x1xf32>
      %c0_18 = arith.constant 0 : index
      %c0_19 = arith.constant 0 : index
      %25 = vector.load %arg5[%c0_18, %c0_19] : memref<32x128xf32, #tpu.memory_space<vmem>>, vector<32x128xf32>
      %26 = vector.broadcast %24 : vector<32x1xf32> to vector<32x128xf32>
      %27 = arith.mulf %25, %26 : vector<32x128xf32>
      %c0_20 = arith.constant 0 : index
      %c0_21 = arith.constant 0 : index
      %28 = vector.load %arg5[%c0_20, %c0_21] : memref<32x128xf32, #tpu.memory_space<vmem>>, vector<32x128xf32>
      tpu.vector_store %arg5[%c0_20, %c0_21], %27 {strides = array<i32>} : memref<32x128xf32, #tpu.memory_space<vmem>>, vector<32x128xf32>,
    } else {
    }
    return
  }
  func.func @transform_0(%arg0: i32, %arg1: i32, %arg2: i32) -> (i32, i32) {
    %c0_i32 = arith.constant 0 : i32
    return %arg0, %arg2 : i32, i32
  }
  func.func @transform_1(%arg0: i32, %arg1: i32, %arg2: i32) -> (i32, i32) {
    %c0_i32 = arith.constant 0 : i32
    return %arg2, %arg1 : i32, i32
  }
  func.func @transform_2(%arg0: i32, %arg1: i32, %arg2: i32) -> (i32, i32) {
    %c0_i32 = arith.constant 0 : i32
    return %arg0, %arg1 : i32, i32
  }
}

</mosaic_0001>

<bundles_post_ra>
// kernel: tpu_custom_call.1
= control target key start
LH: loop header
LB: loop body
LE: loop exit
PB: predicated region body
PF: predicated region fallthrough
CT: control target
= control target key end

     0   :  { %7 = vsyncpa [#allocation4], 0  ;;  %s1219_s0 = inlined_call_operand.hbm [shape: bf16[64,256], index: 0, kind: input, shape index: {}]   ;;  %s1220_s1 = inlined_call_operand.hbm [shape: f32[256,128], index: 1, kind: input, shape index: {}]   ;;  %s1221_s2 = inlined_call_operand.hbm [shape: f32[64,128], index: 2, kind: output, shape index: {}]  }
   0x1   :  { %9 = vsyncpa [#allocation4 + $0x1], 0 }
   0x2   :  { %10 = vsyncpa [#allocation7], 0 }
   0x3   :  { %11 = vsyncpa [#allocation5], 0 }
   0x4   :  { %13 = vsyncpa [#allocation5 + $0x1], 0  ;;  %s942_s9 = smov 0   ;;  %s944_s10 = smov 0  }
   0x5   :  { %s946_s11 = smov 0   ;;  %s948_s12 = smov 0  }
   0x6   :  { %s950_s13 = smov 0   ;;  %s952_s14 = smov 0  }
   0x7 LB: > { %s570_s15 = sadd.s32 4294967295, %s916_s14   ;;  %s571_s16 = sadd.s32 4294967294, %s916_s14   ;;  %s916_s14 = sphi %s952_s14, %s19_s14   ;;  %s912_s13 = sphi %s950_s13, %s1245_s13   ;;  %s908_s12 = sphi %s948_s12, %s1244_s12   ;;  %s904_s11 = sphi %s946_s11, %s1243_s11   ;;  %s900_s10 = sphi %s944_s10, %s1242_s10   ;;  %s896_s9 = sphi %s942_s9, %s1241_s9  }
   0x8   : > { %p60_p0 = scmp.ne.s32.totalorder %s900_s10, %s896_s9  ;;  %p976_p1 = scmp.eq.s32.totalorder %s570_s15, 0 }
   0x9   : > { %p980_p2 = scmp.eq.s32.totalorder %s570_s15, 1  ;;  %p120_p3 = scmp.eq.s32.totalorder %s571_s16, 1 }
   0xa   : > { %s1226_s17 = scalar_select %p976_p1, 1, 0 }
   0xb   : > { %s1227_s18 = scalar_select %p980_p2, 1, 0 }
   0xc   : > { %p986_p4 = por %p976_p1, %p60_p0  ;;  %p572_p5 = scmp.ge.s32.totalorder %s916_s14, 1 }
   0xd   : > { %p991_p6 = por %p120_p3, %p60_p0  ;;  %p127_p7 = scmp.lt.s32.totalorder %s916_s14, 3 }
   0xe   : > { %s1228_s19 = scalar_select %p986_p4, 1, 0 }
   0xf   : > { %s1229_s20 = scalar_select %p991_p6, 1, 0 }
  0x10   : > { %p996_p8 = pnand %p572_p5, %p127_p7  ;;  %s918_s22 = smov [#allocation6]  }
  0x11   : > { %s143_s23 = sshll.u32 %s918_s22, 4  ;;  %s38_s25 = sadd.s32 1, %s912_s13  ;;  %s144_s23 = int_to_ptr.vmem [resolvable:$true] %s143_s23 }
  0x12   : > { %s1230_s21 = scalar_select %p996_p8, 1, 0 }
  0x13   : > { %p691_p9 = pneg %p996_p8  ;;  %s772_s28 = scalar_lea.hbm %s1220_s1, 4096 }
  0x14   : > { %p773_p12 = scmp.ne.s32.totalorder %s1220_s1, %s772_s28  ;;  %p779_p5 = scmp.lt.u32.totalorder %s772_s28, %s1220_s1 }
  0x15   : > { %p1005_p11 = pnand %p691_p9, %p976_p1 }
  0x17   : > { %p774_p13 = pneg %p1005_p11 }
  0x19   : > { %p775_p0 = pnand %p774_p13, %p773_p12 }
  0x1b   : > { %p776_p3 = pneg %p775_p0 }
  0x1d   : > { %p781_p7 = pnand %p779_p5, %p776_p3 }
  0x1f   : > { %784 = shalt.err (!%p781_p7)
}
  0x20   : > { %s785_s5 = scalar_lea.vmem %s144_s23, 4096  ;;  %p793_p1 = scmp.lt.s32.totalorder %s144_s23, %s144_s23 }
  0x21   : > { %p786_p9 = scmp.ne.s32.totalorder %s144_s23, %s785_s5  ;;  %p794_p4 = scmp.lt.s32.totalorder %s785_s5, %s785_s5 }
  0x23   : > { %p788_p10 = pnand %p786_p9, %p774_p13  ;;  %p795_p8 = por %p794_p4, %p793_p1 }
  0x25   : > { %p789_p6 = pneg %p788_p10 }
  0x27   : > { %p796_p2 = pnand %p795_p8, %p789_p6 }
  0x29   : > { %799 = shalt.err (!%p796_p2)
}
  0x2a   : > { %s919_s6 = smov 128   ;;  %s920_s7 = smov 8  }
  0x2b   : > { %694 = dma.hbm_to_vmem [thread:$0]  (!%p1005_p11), %s1220_s1, 4096, %s144_s23, [#allocation7], %s919_s6, %s919_s6, %s920_s7  }
  0x2c   : > { %p40_p1 = scmp.ge.s32.totalorder %s38_s25, 2  ;;  %s47_s16 = sadd.s32 1, %s904_s11 }
  0x2d   : > { %p54_p2 = scmp.ne.s32.totalorder %s904_s11, %s900_s10  ;;  %p55_p4 = scmp.eq.s32.totalorder %s916_s14, 0 }
  0x2e   : > { %s1247_s25 = smov (%p40_p1, %s38_s25), 0  ;;  %p1233_p8 = scmp.ne.s32.totalorder %s1227_s18, 0 }
  0x2f   : > { %p1035_p6 = por %p55_p4, %p54_p2  ;;  %s42_s26 = ssub.s32 %s912_s13, %s1247_s25 }
  0x30   : > { %p1041_p10 = por %p1233_p8, %p54_p2  ;;  %p704_p12 = scmp.lt.s32.totalorder %s916_s14, 2 }
  0x31   : > { %p45_p11 = scmp.eq.s32.totalorder %s42_s26, 0  ;;  %s157_s23 = sand.u32 1, %s904_s11  }
  0x32   : > { %s575_s27 = sshll.u32 %s157_s23, 5  ;;  %s589_s29 = sshll.u32 %s912_s13, 9 }
  0x33   : > { %s1050_s28 = scalar_select %p45_p11, %s904_s11, %s47_s16  }
  0x34   : > { %s1056_s4 = scalar_lea.hbm %s1219_s0, %s589_s29  ;;  %s161_s18 = scalar_lea.vmem [#allocation3], %s575_s27 }
  0x35   : > { %s171_s5 = sshll.u32 %s161_s18, 4  ;;  %p1062_p13 = pnand %p704_p12, %p1035_p6  ;;  %s1058_s5 = int_to_ptr.vmem [resolvable:$true] %s171_s5 }
  0x36   : > { %s1066_s15 = scalar_lea.sflag [#allocation4], %s157_s23  ;;  %s800_s16 = scalar_lea.hbm %s1056_s4, 512 }
  0x37   : > { %p801_p0 = scmp.ne.s32.totalorder %s1056_s4, %s800_s16  ;;  %p802_p3 = pneg %p1062_p13 }
  0x38   : > { %s805_s22 = scalar_lea.hbm %s1219_s0, 1024  ;;  %p806_p9 = scmp.lt.u32.totalorder %s1056_s4, %s1219_s0 }
  0x39   : > { %p803_p5 = pnand %p802_p3, %p801_p0  ;;  %p807_p1 = scmp.lt.u32.totalorder %s805_s22, %s800_s16 }
  0x3a   : > { %p809_p4 = scmp.lt.u32.totalorder %s800_s16, %s1056_s4 }
  0x3b   : > { %p804_p7 = pneg %p803_p5  ;;  %p808_p2 = por %p807_p1, %p806_p9 }
  0x3d   : > { %p810_p6 = por %p809_p4, %p808_p2 }
  0x3f   : > { %p811_p8 = pnand %p810_p6, %p804_p7 }
  0x41   : > { %814 = shalt.err (!%p811_p8)
}
  0x42   : > { %s815_s23 = scalar_lea.vmem %s1058_s5, 512  ;;  %s921_s3 = smov [#allocation3]  }
  0x43   : > { %p816_p12 = scmp.ne.s32.totalorder %s1058_s5, %s815_s23  ;;  %s820_s18 = sshll.u32 %s921_s3, 4  ;;  %s821_s18 = int_to_ptr.vmem [resolvable:$false] %s820_s18 }
  0x44   : > { %s822_s26 = scalar_lea.vmem %s821_s18, 1024  ;;  %p823_p5 = scmp.lt.s32.totalorder %s1058_s5, %s821_s18 }
  0x45   : > { %p818_p11 = pnand %p816_p12, %p802_p3  ;;  %p824_p9 = scmp.lt.s32.totalorder %s822_s26, %s815_s23 }
  0x47   : > { %p819_p0 = pneg %p818_p11  ;;  %p825_p1 = por %p824_p9, %p823_p5 }
  0x49   : > { %p826_p2 = pnand %p825_p1, %p819_p0 }
  0x4b   : > { %829 = shalt.err (!%p826_p2)
}
  0x4c   : > { %698 = dma.hbm_to_vmem [thread:$0]  (!%p1062_p13), %s1056_s4, 512, %s1058_s5, %s1066_s15, %s919_s6, %s919_s6, %s920_s7  }
  0x4d   : > { %p1236_p3 = scmp.ne.s32.totalorder %s1230_s21, 0 }
  0x4e   : > { %s1100_s16 = sand.u32 (!%p1236_p3), 1, %s900_s10   ;;  %p1237_p7 = scmp.ne.s32.totalorder (!%p1236_p3), %s1228_s19, 0 }
  0x4f   : > { %183 = sbr.rel (%p1236_p3) target bundleno = 417 (0x1a1), region = 28  ;;  %s580_s27 = sshll.u32 (!%p1236_p3), %s1100_s16, 5 }
  0x50   : > { %s186_s22 = scalar_lea.sflag (!%p1236_p3), [#allocation4], %s1100_s16  ;;  %s189_s8 = scalar_lea.vmem (!%p1236_p3), [#allocation3], %s580_s27 }
  0x56   : > { %883 = dma.done.wait (%p1237_p7), %s186_s22, 512  }
  0x57   : > { %885 = vsyncadd (%p1237_p7), %s186_s22, 4294966784  ;;  %p1238_p13 = scmp.ne.s32.totalorder %s1226_s17, 0 }
  0x59   : > { %887 = dma.done.wait (%p1238_p13), [#allocation7], 4096  }
  0x5a   : > { %889 = vsyncadd (%p1238_p13), [#allocation7], 4294963200  ;;  %vm372_vm0 = vcmask 7168   ;;  %v922_v0 = vmov 0.0   ;;  %v1118_v1 = vld [vmem:[%s189_s8] sm:$0xff]  ;;  %v1120_v2 = vld [vmem:[%s189_s8 + $0x8] sm:$0xff] }
  0x5b   : > { %373 = vst.msk [vmem:[#allocation2] sm:$0xff] %vm372_vm0, %v922_v0  ;;  %374 = vst.msk [vmem:[#allocation2 + $0x8] sm:$0xff] %vm372_vm0, %v922_v0  ;;  %v1122_v3 = vld [vmem:[%s189_s8 + $0x10] sm:$0xff]  ;;  %v230_v4 = vunpack.c.l.bf16 %v1118_v1  ;;  %v231_v5 = vunpack.c.h.bf16 %v1118_v1  ;;  %v232_v6 = vunpack.c.l.bf16 %v1120_v2  ;;  %v233_v7 = vunpack.c.h.bf16 %v1120_v2  ;;  %v1128_v8 = vld [vmem:[%s189_s8 + $0x18] sm:$0xff]  ;;  %s213_s17 = scalar_lea.vmem [#allocation8], %s580_s27  ;;  %s590_s19 = sshll.u32 %s908_s12, 9 }
  0x5c   : > { %375 = vst.msk [vmem:[#allocation2 + $0x10] sm:$0xff] %vm372_vm0, %v922_v0  ;;  %376 = vst.msk [vmem:[#allocation2 + $0x18] sm:$0xff] %vm372_vm0, %v922_v0  ;;  %v258_v9 = vld [vmem:[#allocation6 + $0x80] sm:$0xff]  ;;  %v259_v10 = vld [vmem:[#allocation6 + $0x88] sm:$0xff]  ;;  %v234_v11 = vunpack.c.l.bf16 %v1122_v3  ;;  %v235_v12 = vunpack.c.h.bf16 %v1122_v3  ;;  %v236_v13 = vunpack.c.l.bf16 %v1128_v8  ;;  %v237_v14 = vunpack.c.h.bf16 %v1128_v8  ;;  %s467_s21 = sshll.u32 %s213_s17, 4  ;;  %s1168_s4 = scalar_lea.hbm %s1221_s2, %s590_s19  ;;  %s1170_s21 = int_to_ptr.vmem [resolvable:$true] %s467_s21 }
  0x5d   : > { %v242_v15 = vld [vmem:[#allocation6] sm:$0xff]  ;;  %v243_v16 = vld [vmem:[#allocation6 + $0x8] sm:$0xff]  ;;  %v260_v17 = vld [vmem:[#allocation6 + $0x90] sm:$0xff]  ;;  %v384_v18 = vadd.f32 %v231_v5, %v230_v4  ;;  %v635_v19 = vpack.c.bf16 %v259_v10, %v258_v9  ;;  %338 = vmatprep.mubr.f32.mxu0 %v231_v5  ;;  %v387_v28 = vadd.f32 %v233_v7, %v232_v6  ;;  %v923_v0 = vmov 0   ;;  %s453_s5 = scalar_lea.sflag [#allocation5], %s1100_s16  ;;  %s830_s15 = scalar_lea.vmem %s1170_s21, 512 }
  0x5e   : > { %v637_v20 = vpack.c.bf16 %v243_v16, %v242_v15  ;;  %v261_v21 = vld [vmem:[#allocation6 + $0x98] sm:$0xff]  ;;  %v244_v22 = vld [vmem:[#allocation6 + $0x10] sm:$0xff]  ;;  %v390_v24 = vadd.f32 %v235_v12, %v234_v11  ;;  %v262_v26 = vld [vmem:[#allocation6 + $0xa0] sm:$0xff]  ;;  %348 = vmatprep.mubr.f32.mxu1 %v235_v12  ;;  %v393_v29 = vadd.f32 %v237_v14, %v236_v13  ;;  %762 = vset.pattern.permute.xlu0 %v923_v0  ;;  %p831_p4 = scmp.ne.s32.totalorder %s1170_s21, %s830_s15  ;;  %s924_s12 = smov [#allocation8]  }
  0x5f   : > { %v245_v23 = vld [vmem:[#allocation6 + $0x18] sm:$0xff]  ;;  %v639_v25 = vpack.c.bf16 %v261_v21, %v260_v17  ;;  %v263_v27 = vld [vmem:[#allocation6 + $0xa8] sm:$0xff]  ;;  %385 = vadd.xlane.f32.xlu0 %v384_v18  ;;  %636 = vmatprep.subr.bf16.mxu0 %v635_v19  ;;  %v246_v32 = vld [vmem:[#allocation6 + $0x20] sm:$0xff]  ;;  %s834_s29 = sshll.u32 %s924_s12, 4  ;;  %s835_s29 = int_to_ptr.vmem [resolvable:$false] %s834_s29 }
  0x60   : > { %391 = vadd.xlane.f32.xlu1 %v390_v24  ;;  %638 = vmatpush3.bf16.msra.mxu0 %v637_v20  ;;  %v641_v30 = vpack.c.bf16 %v245_v23, %v244_v22  ;;  %v643_v31 = vpack.c.bf16 %v263_v27, %v262_v26  ;;  %v247_v33 = vld [vmem:[#allocation6 + $0x28] sm:$0xff]  ;;  %v264_v34 = vld [vmem:[#allocation6 + $0xb0] sm:$0xff]  ;;  %v265_v35 = vld [vmem:[#allocation6 + $0xb8] sm:$0xff]  ;;  %p832_p6 = pnand %p831_p4, %p1041_p10  ;;  %s836_s30 = scalar_lea.vmem %s835_s29, 1024 }
  0x61   : > { %640 = vmatprep.subr.bf16.mxu0 %v639_v25  ;;  %667 = vmatprep.subr.bf16.mxu1 %v635_v19  ;;  %v645_v36 = vpack.c.bf16 %v247_v33, %v246_v32  ;;  %v647_v37 = vpack.c.bf16 %v265_v35, %v264_v34  ;;  %v248_v38 = vld [vmem:[#allocation6 + $0x30] sm:$0xff]  ;;  %v249_v39 = vld [vmem:[#allocation6 + $0x38] sm:$0xff]  ;;  %v266_v40 = vld [vmem:[#allocation6 + $0xc0] sm:$0xff]  ;;  %p837_p12 = scmp.lt.s32.totalorder %s1170_s21, %s835_s29  ;;  %p838_p11 = scmp.lt.s32.totalorder %s836_s30, %s830_s15 }
  0x62   : > { %675 = vmatpush3.bf16.msra.mxu1 %v637_v20  ;;  %v267_v41 = vld [vmem:[#allocation6 + $0xc8] sm:$0xff]  ;;  %v649_v42 = vpack.c.bf16 %v249_v39, %v248_v38  ;;  %v250_v44 = vld [vmem:[#allocation6 + $0x40] sm:$0xff]  ;;  %v268_v46 = vld [vmem:[#allocation6 + $0xd0] sm:$0xff]  ;;  %763 = vset.pattern.permute.xlu1 %v923_v0  ;;  %p833_p8 = pneg %p832_p6 }
  0x63   : > { %388 = vadd.xlane.f32.xlu0 %v387_v28  ;;  %668 = vmatprep.subr.bf16.mxu1 %v639_v25  ;;  %v651_v43 = vpack.c.bf16 %v267_v41, %v266_v40  ;;  %v251_v45 = vld [vmem:[#allocation6 + $0x48] sm:$0xff]  ;;  %v269_v47 = vld [vmem:[#allocation6 + $0xd8] sm:$0xff]  ;;  %v252_v50 = vld [vmem:[#allocation6 + $0x50] sm:$0xff]  ;;  %p839_p0 = por %p838_p11, %p837_p12 }
  0x64   : > { %394 = vadd.xlane.f32.xlu1 %v393_v29  ;;  %642 = vmatpush3.bf16.msra.mxu0 %v641_v30  ;;  %v653_v48 = vpack.c.bf16 %v251_v45, %v250_v44  ;;  %v655_v49 = vpack.c.bf16 %v269_v47, %v268_v46  ;;  %v253_v51 = vld [vmem:[#allocation6 + $0x58] sm:$0xff]  ;;  %v270_v52 = vld [vmem:[#allocation6 + $0xe0] sm:$0xff]  ;;  %v271_v53 = vld [vmem:[#allocation6 + $0xe8] sm:$0xff] }
  0x65   : > { %644 = vmatprep.subr.bf16.mxu0 %v643_v31  ;;  %v657_v54 = vpack.c.bf16 %v253_v51, %v252_v50  ;;  %v659_v55 = vpack.c.bf16 %v271_v53, %v270_v52  ;;  %v254_v56 = vld [vmem:[#allocation6 + $0x60] sm:$0xff]  ;;  %v255_v57 = vld [vmem:[#allocation6 + $0x68] sm:$0xff]  ;;  %v272_v58 = vld [vmem:[#allocation6 + $0xf0] sm:$0xff]  ;;  %p840_p5 = pnand %p839_p0, %p833_p8 }
  0x66   : > { %676 = vmatpush3.bf16.msra.mxu1 %v641_v30  ;;  %v273_v59 = vld [vmem:[#allocation6 + $0xf8] sm:$0xff]  ;;  %v661_v60 = vpack.c.bf16 %v255_v57, %v254_v56  ;;  %v256_v62 = vld [vmem:[#allocation6 + $0x70] sm:$0xff]  ;;  %v380_v9 = vld [vmem:[#allocation2] sm:$0xff] }
  0x67   : > { %669 = vmatprep.subr.bf16.mxu1 %v643_v31  ;;  %v663_v61 = vpack.c.bf16 %v273_v59, %v272_v58  ;;  %v257_v63 = vld [vmem:[#allocation6 + $0x78] sm:$0xff]  ;;  %v382_v10 = vld [vmem:[#allocation2 + $0x10] sm:$0xff]  ;;  %v381_v15 = vld [vmem:[#allocation2 + $0x8] sm:$0xff] }
  0x68   : > { %646 = vmatpush3.bf16.msra.mxu0 %v645_v36  ;;  %v665_v5 = vpack.c.bf16 %v257_v63, %v256_v62  ;;  %v383_v3 = vld [vmem:[#allocation2 + $0x18] sm:$0xff] }
  0x69   : > { %648 = vmatprep.subr.bf16.mxu0 %v647_v37 }
  0x6a   : > { %677 = vmatpush3.bf16.msra.mxu1 %v645_v36 }
  0x6b   : > { %670 = vmatprep.subr.bf16.mxu1 %v647_v37 }
  0x6c   : > { %650 = vmatpush3.bf16.msra.mxu0 %v649_v42 }
  0x6d   : > { %652 = vmatprep.subr.bf16.mxu0 %v651_v43 }
  0x6e   : > { %678 = vmatpush3.bf16.msra.mxu1 %v649_v42 }
  0x6f   : > { %671 = vmatprep.subr.bf16.mxu1 %v651_v43 }
  0x70   : > { %654 = vmatpush3.bf16.msra.mxu0 %v653_v48 }
  0x71   : > { %656 = vmatprep.subr.bf16.mxu0 %v655_v49 }
  0x72   : > { %679 = vmatpush3.bf16.msra.mxu1 %v653_v48 }
  0x73   : > { %672 = vmatprep.subr.bf16.mxu1 %v655_v49 }
  0x74   : > { %658 = vmatpush3.bf16.msra.mxu0 %v657_v54 }
  0x75   : > { %660 = vmatprep.subr.bf16.mxu0 %v659_v55 }
  0x76   : > { %680 = vmatpush3.bf16.msra.mxu1 %v657_v54 }
  0x77   : > { %673 = vmatprep.subr.bf16.mxu1 %v659_v55 }
  0x78   : > { %662 = vmatpush3.bf16.msra.mxu0 %v661_v60 }
  0x79   : > { %664 = vmatprep.subr.bf16.mxu0 %v663_v61 }
  0x7a   : > { %681 = vmatpush3.bf16.msra.mxu1 %v661_v60 }
  0x7b   : > { %674 = vmatprep.subr.bf16.mxu1 %v663_v61 }
  0x7c   : > { %666 = vmatpush3.bf16.msra.mxu0 %v665_v5 }
  0x7e   : > { %682 = vmatpush3.bf16.msra.mxu1 %v665_v5 }
  0x7f   : > { %339 = vmatmul.mubr.f32.vlgmr.msra.gmra.mrb[0].mxu0 %v230_v4 }
  0x80   : > { %343 = vmatprep.mubr.f32.mxu0 %v233_v7 }
  0x81   : > { %349 = vmatmul.mubr.f32.vlgmr.msra.gmra.mrb[0].mxu1 %v234_v11 }
  0x82   : > { %353 = vmatprep.mubr.f32.mxu1 %v237_v14 }
  0x83   : > { %344 = vmatmul.mubr.f32.gmra.mrb[2].mxu0 %v232_v6 }
  0x85   : > { %354 = vmatmul.mubr.f32.gmra.mrb[2].mxu1 %v236_v13 }
  0xec   : > { %v386_v12 = vpop.xlane.xlu0 %385 }
  0xed   : > { %v396_v1 = vadd.f32 %v386_v12, %v380_v9  ;;  %v392_v4 = vpop.xlane.xlu1 %391 }
  0xee   : > { %v398_v16 = vadd.f32 %v392_v4, %v382_v10 }
  0xef   : > { %401 = vst.msk [vmem:[#allocation2] sm:$0xff] %vm372_vm0, %v396_v1 }
  0xf0   : > { %v389_v7 = vpop.xlane.xlu0 %388  ;;  %403 = vst.msk [vmem:[#allocation2 + $0x10] sm:$0xff] %vm372_vm0, %v398_v16 }
  0xf1   : > { %v397_v11 = vadd.f32 %v389_v7, %v381_v15  ;;  %v395_v14 = vpop.xlane.xlu1 %394 }
  0xf2   : > { %v399_v2 = vadd.f32 %v395_v14, %v383_v3 }
  0xf3   : > { %402 = vst.msk [vmem:[#allocation2 + $0x8] sm:$0xff] %vm372_vm0, %v397_v11 }
  0xf4   : > { %404 = vst.msk [vmem:[#allocation2 + $0x18] sm:$0xff] %vm372_vm0, %v399_v2 }
  0xf6   : > { %v408_v6 = vld [vmem:[#allocation2] sm:$0xff] }
  0xf7   : > { %v412_v8 = vmax.f32 %v408_v6, 1.0  ;;  %v410_v13 = vld [vmem:[#allocation2 + $0x10] sm:$0xff] }
  0xf8   : > { %v414_v19 = vmax.f32 %v410_v13, 1.0 }
  0xf9   : > { %764 = vrcp.f32 %v412_v8 }
  0xfa   : > { %v409_v17 = vld [vmem:[#allocation2 + $0x8] sm:$0xff] }
  0xfb   : > { %v413_v18 = vmax.f32 %v409_v17, 1.0  ;;  %v411_v20 = vld [vmem:[#allocation2 + $0x18] sm:$0xff] }
  0xfc   : > { %v415_v21 = vmax.f32 %v411_v20, 1.0 }
  0xfd   : > { %766 = vrcp.f32 %v413_v18 }
  0xfe   : > { %768 = vrcp.f32 %v414_v19 }
  0xff   : > { %770 = vrcp.f32 %v415_v21 }
 0x103   : > { %v765_v22 = vpop.eup %764 }
 0x104   : > { %426 = vperm.xlu0 %762, %v765_v22  }
 0x107   : > { %v767_v23 = vpop.eup %766 }
 0x108   : > { %431 = vperm.xlu1 %763, %v767_v23   ;;  %v769_v24 = vpop.eup %768 }
 0x109   : > { %v771_v25 = vpop.eup %770 }
 0x10c   : > { %436 = vperm.xlu1 %763, %v769_v24  }
 0x110   : > { %441 = vperm.xlu1 %763, %v771_v25  }
 0x152   : > { %v623_v26 = vpop.f32.mrb[0].mxu0 }
 0x153   : > { %v624_v27 = vpop.f32.mrb[1].mxu0 }
 0x154   : > { %v625_v28 = vadd.f32 %v624_v27, %v623_v26  ;;  %v629_v29 = vpop.f32.mrb[0].mxu1 }
 0x155   : > { %v630_v30 = vpop.f32.mrb[1].mxu1 }
 0x156   : > { %v626_v31 = vpop.f32.mrb[2].mxu0  ;;  %v631_v32 = vadd.f32 %v630_v30, %v629_v29 }
 0x157   : > { %v627_v33 = vpop.f32.mrb[3].mxu0 }
 0x158   : > { %v628_v34 = vadd.f32 %v627_v33, %v626_v31  ;;  %v632_v35 = vpop.f32.mrb[2].mxu1 }
 0x159   : > { %v633_v36 = vpop.f32.mrb[3].mxu1 }
 0x15a   : > { %v634_v37 = vadd.f32 %v633_v36, %v632_v35 }
 0x183   : > { %v427_v38 = vpop.permute.xlu0 %426 }
 0x184   : > { %v444_v39 = vmul.f32 %v625_v28, %v427_v38 }
 0x186   : > { %448 = vst [vmem:[%s213_s17] sm:$0xff] %v444_v39 }
 0x187   : > { %v432_v40 = vpop.permute.xlu1 %431 }
 0x188   : > { %v445_v41 = vmul.f32 %v628_v34, %v432_v40 }
 0x18a   : > { %449 = vst [vmem:[%s213_s17 + $0x8] sm:$0xff] %v445_v41 }
 0x18b   : > { %v437_v42 = vpop.permute.xlu1 %436 }
 0x18c   : > { %v446_v43 = vmul.f32 %v631_v32, %v437_v42 }
 0x18e   : > { %450 = vst [vmem:[%s213_s17 + $0x10] sm:$0xff] %v446_v43 }
 0x18f   : > { %v442_v44 = vpop.permute.xlu1 %441 }
 0x190   : > { %v447_v45 = vmul.f32 %v634_v37, %v442_v44 }
 0x192   : > { %451 = vst [vmem:[%s213_s17 + $0x18] sm:$0xff] %v447_v45 }
 0x193   : > { %843 = shalt.err (!%p840_p5)
}
 0x194   : > { %s844_s23 = scalar_lea.hbm %s1168_s4, 512  ;;  %s848_s26 = scalar_lea.hbm %s1221_s2, 1024 }
 0x195   : > { %p845_p9 = scmp.ne.s32.totalorder %s1168_s4, %s844_s23  ;;  %p849_p3 = scmp.lt.u32.totalorder %s1168_s4, %s1221_s2 }
 0x196   : > { %p850_p7 = scmp.lt.u32.totalorder %s848_s26, %s844_s23  ;;  %p852_p4 = scmp.lt.u32.totalorder %s844_s23, %s1168_s4 }
 0x197   : > { %p846_p1 = pnand %p845_p9, %p1041_p10 }
 0x198   : > { %p851_p13 = por %p850_p7, %p849_p3 }
 0x199   : > { %p847_p2 = pneg %p846_p1 }
 0x19a   : > { %p853_p6 = por %p852_p4, %p851_p13 }
 0x19c   : > { %p854_p8 = pnand %p853_p6, %p847_p2 }
 0x19e   : > { %857 = shalt.err (!%p854_p8)
}
 0x19f   : > { %s925_s8 = smov 128   ;;  %s926_s17 = smov 8  }
 0x1a0   : > { %689 = dma.vmem_to_hbm [thread:$0]  (%p1041_p10), %s1170_s21, 512, %s1168_s4, %s453_s5, %s925_s8, %s925_s8, %s926_s17  }
 0x1a1 PF: > { %s482_s19 = sand.u32 1, %s896_s9   ;;  %p1239_p12 = scmp.ne.s32.totalorder %s1229_s20, 0 }
 0x1a2   : > { %p1240_p11 = scmp.ge.s32.totalorder %s916_s14, 2  ;;  %s483_s6 = scalar_lea.sflag [#allocation5], %s482_s19 }
 0x1a4   : > { %p700_p0 = pnand %p1240_p11, %p1239_p12 }
 0x1a6   : > { %891 = dma.done.wait (!%p700_p0), %s483_s6, 512  }
 0x1a7   : > { %893 = vsyncadd (!%p700_p0), %s483_s6, 4294966784  ;;  %s19_s14 = sadd.s32 1, %s916_s14   ;;  %s1241_s9 = smov %s900_s10 }
 0x1a8   : > { %p16_p5 = scmp.ge.s32.totalorder %s19_s14, 4   ;;  %s1242_s10 = smov %s904_s11 }
 0x1a9   : > { %s1243_s11 = smov %s1050_s28  ;;  %s1244_s12 = smov %s912_s13 }
 0x1aa   : > { %s1245_s13 = smov %s1247_s25  ;;  %18 = sbr.rel (!%p16_p5) target bundleno = 7 (0x7), region = 94 }
 0x1b1   :  { %488 = vsyncpa [#allocation4], 1 }
 0x1b2   :  { %490 = vsyncpa [#allocation4 + $0x1], 1 }
 0x1b3   :  { %491 = vsyncpa [#allocation7], 1 }
 0x1b4   :  { %492 = vsyncpa [#allocation5], 1 }
 0x1b5   :  { %494 = vsyncpa [#allocation5 + $0x1], 1 }

</bundles_post_ra>
